<compile_context>
chip_gen: v7x
topology: tpu7x:2x2x1
jax: 0.10.0
libtpu: 0.0.40
codegen_flags: <defaults>
</compile_context>

<pallas_src>
import jax
import jax.numpy as jnp
from jax.experimental import pallas as pl
from jax.experimental.pallas import tpu as pltpu

HIDDEN = 128
NUM_HEADS = 8
HEAD_DIM = HIDDEN // NUM_HEADS          # 16
SCALE = HEAD_DIM ** (-0.5)

MAX_BATCH_TILE = 8192                    # 8192*128*4 = 4 MiB per data buffer


def _multi_attention_kernel(v_ref, w_ref, b_ref, out_ref):
    # Single fused GEMM on the MXU: out = v @ (Wv @ Wo) + (bv @ Wo + bo).
    # seq_len == 1  ->  attention probs are exactly 1.0 (softmax of a size-1
    # axis), so the context equals the value projection.
    # TODO(synk): attention dropout is eval-mode identity (no RNG in kernel).
    out = jnp.dot(v_ref[...], w_ref[...],
                  preferred_element_type=jnp.float32) + b_ref[...]
    out_ref[...] = out.astype(out_ref.dtype)


def _round_up(x, m):
    return (x + m - 1) // m * m


def multi_attention(q, k, v, params, *, batch_tile=4096):
    """Forward pass of MultiAttention (eval mode).

    q, k, v: (B, HIDDEN) float32.  Returns (B, 1, HIDDEN) to match the PyTorch
    module's (batch, seq=1, hidden) output.

    q and k are accepted for API parity with the PyTorch module but are not
    read: with seq_len == 1 the attention weights are identically 1, so the
    output depends only on v (exact identity in eval mode).
    """
    del q, k
    B = v.shape[0]

    # Weight fusion (constant-folds once under jit; exact up to fp reassoc).
    w_fused = jnp.dot(params["wv"], params["wo"],
                      preferred_element_type=jnp.float32)           # (128,128)
    b_fused = jnp.dot(params["bv"], params["wo"],
                      preferred_element_type=jnp.float32) + params["bo"]  # (1,128)

    # Batch tile: as large as practical (per-grid-step overhead dominates for
    # tiny tiles), multiple of 8 (sublane constraint), capped so the grid has
    # >= 2 steps when B allows it (keeps both v7x TensorCores busy), and
    # bounded by MAX_BATCH_TILE for VMEM.  Partial final blocks are handled
    # by Pallas (masked writeback), so B need not divide tb.
    half = max(8, _round_up(pl.cdiv(B, 2), 8))
    tb = max(8, min(batch_tile, MAX_BATCH_TILE, half))
    grid = (pl.cdiv(B, tb),)

    data_spec = pl.BlockSpec((tb, HIDDEN), lambda i: (i, 0))
    # Grid-invariant operands: fetched once, stay VMEM-resident.
    # (Single-buffering them via pl.Buffered(1) would save ~130 KiB; skipped
    #  as marginal polish not worth any lowering risk for a 64 KiB weight.)
    w_spec = pl.BlockSpec((HIDDEN, HIDDEN), lambda i: (0, 0))
    b_spec = pl.BlockSpec((1, HIDDEN), lambda i: (0, 0))

    # VMEM budget: double-buffered input + output tiles plus generous slack
    # for the resident weight/bias and compiler internals.  Stays under the
    # v7x 64 MiB physical VMEM with headroom; above v5e's 16 MiB scoped
    # default so large tiles are permitted there too.
    vmem_limit = min(4 * tb * HIDDEN * 4 + (16 << 20), 48 << 20)

    cost = pl.CostEstimate(
        flops=2 * B * HIDDEN * HIDDEN,                       # post-fusion GEMM
        transcendentals=0,
        bytes_accessed=2 * B * HIDDEN * 4 + (HIDDEN * HIDDEN + HIDDEN) * 4)

    out2d = pl.pallas_call(
        _multi_attention_kernel,
        out_shape=jax.ShapeDtypeStruct((B, HIDDEN), jnp.float32),
        grid=grid,
        in_specs=[data_spec, w_spec, b_spec],
        out_specs=data_spec,
        compiler_params=pltpu.CompilerParams(
            dimension_semantics=("parallel",),       # megacore sharding
            vmem_limit_bytes=vmem_limit),
        cost_estimate=cost,
    )(v, w_fused, b_fused)
    return out2d.reshape(B, 1, HIDDEN)


def reference(q, k, v, p):
    """Plain-JAX transcription of the full PyTorch forward (eval mode),
    including the (algebraically dead) Q/K path, used to verify the kernel."""
    B = q.shape[0]
    Q = (q @ p["wq"] + p["bq"]).reshape(B, 1, NUM_HEADS, HEAD_DIM).transpose(0, 2, 1, 3)
    K = (k @ p["wk"] + p["bk"]).reshape(B, 1, NUM_HEADS, HEAD_DIM).transpose(0, 2, 3, 1)
    V = (v @ p["wv"] + p["bv"]).reshape(B, 1, NUM_HEADS, HEAD_DIM).transpose(0, 2, 1, 3)
    x = jnp.matmul(Q * SCALE, K)                     # (B, H, 1, 1)
    x = jax.nn.softmax(x, axis=3)
    x = jnp.matmul(x, V)                             # (B, H, 1, d_v)
    x = x.transpose(0, 2, 1, 3).reshape(B, -1, NUM_HEADS * HEAD_DIM)
    return x @ p["wo"] + p["bo"]                     # (B, 1, HIDDEN)


if __name__ == "__main__":
    key = jax.random.PRNGKey(0)
    keys = jax.random.split(key, 14)

    def init_w(kk):
        return 0.02 * jax.random.normal(kk, (HIDDEN, HIDDEN), jnp.float32)

    def init_b(kk):
        return 0.02 * jax.random.normal(kk, (1, HIDDEN), jnp.float32)

    params = {
        "wq": init_w(keys[3]), "bq": init_b(keys[4]),
        "wk": init_w(keys[5]), "bk": init_b(keys[6]),
        "wv": init_w(keys[7]), "bv": init_b(keys[8]),
        "wo": init_w(keys[9]), "bo": init_b(keys[10]),
    }

    # Small-shape check (single grid step).
    B = 8
    q = jax.random.normal(keys[0], (B, HIDDEN), jnp.float32)
    k = jax.random.normal(keys[1], (B, HIDDEN), jnp.float32)
    v = jax.random.normal(keys[2], (B, HIDDEN), jnp.float32)

    out = multi_attention(q, k, v, params)
    jax.block_until_ready(out)
    ref = reference(q, k, v, params)
    assert out.shape == (B, 1, HIDDEN)
    assert jnp.allclose(out, ref, atol=1e-4, rtol=1e-4)

    # Multi-step grid check (3 grid steps, last block partial) to exercise
    # batch tiling / masked writeback with a forced-small tile.
    B2 = 20
    q2 = jax.random.normal(keys[11], (B2, HIDDEN), jnp.float32)
    k2 = jax.random.normal(keys[12], (B2, HIDDEN), jnp.float32)
    v2 = jax.random.normal(keys[13], (B2, HIDDEN), jnp.float32)

    out2 = multi_attention(q2, k2, v2, params, batch_tile=8)
    jax.block_until_ready(out2)
    ref2 = reference(q2, k2, v2, params)
    assert out2.shape == (B2, 1, HIDDEN)
    assert jnp.allclose(out2, ref2, atol=1e-4, rtol=1e-4)

    print("KERNEL_OK")
</pallas_src>

<mosaic_0001>
module attributes {stable_mosaic.version = 11 : i64} {
  func.func @_multi_attention_kernel(%arg0: i32, %arg1: memref<8x128xf32, #tpu.memory_space<vmem>>, %arg2: memref<128x128xf32, #tpu.memory_space<vmem>>, %arg3: memref<1x128xf32, #tpu.memory_space<vmem>>, %arg4: memref<8x128xf32, #tpu.memory_space<vmem>>) attributes {dimension_semantics = [#tpu.dimension_semantics<parallel>], iteration_bounds = array<i64: 1>, scalar_prefetch = 0 : i64, scratch_operands = 0 : i64, tpu.core_type = #tpu.core_type<tc>, window_params = [{transform_indices = @transform_0, window_bounds = array<i64: 8, 128>}, {pipeline_mode = #tpu.pipeline_mode<synchronous>, transform_indices = @transform_1, window_bounds = array<i64: 128, 128>}, {pipeline_mode = #tpu.pipeline_mode<synchronous>, transform_indices = @transform_2, window_bounds = array<i64: 1, 128>}, {transform_indices = @transform_3, window_bounds = array<i64: 8, 128>}]} {
    %c0 = arith.constant 0 : index
    %c0_0 = arith.constant 0 : index
    %0 = vector.load %arg1[%c0, %c0_0] : memref<8x128xf32, #tpu.memory_space<vmem>>, vector<8x128xf32>
    %c0_1 = arith.constant 0 : index
    %c0_2 = arith.constant 0 : index
    %1 = vector.load %arg2[%c0_1, %c0_2] : memref<128x128xf32, #tpu.memory_space<vmem>>, vector<128x128xf32>
    %cst = arith.constant dense<0.000000e+00> : vector<8x128xf32>
    %2 = tpu.matmul %0, %1, %cst {dimension_numbers = #tpu.dot_dimension_numbers<[1], [0], [0], [1], [0, 0, 1, 1], [], []>} : vector<8x128xf32>, vector<128x128xf32>, vector<8x128xf32> -> vector<8x128xf32>
    %c0_3 = arith.constant 0 : index
    %c0_4 = arith.constant 0 : index
    %3 = vector.load %arg3[%c0_3, %c0_4] : memref<1x128xf32, #tpu.memory_space<vmem>>, vector<1x128xf32>
    %4 = vector.broadcast %3 : vector<1x128xf32> to vector<8x128xf32>
    %5 = arith.addf %2, %4 : vector<8x128xf32>
    %c0_5 = arith.constant 0 : index
    %c0_6 = arith.constant 0 : index
    %6 = vector.load %arg4[%c0_5, %c0_6] : memref<8x128xf32, #tpu.memory_space<vmem>>, vector<8x128xf32>
    tpu.vector_store %arg4[%c0_5, %c0_6], %5 {strides = array<i32>} : memref<8x128xf32, #tpu.memory_space<vmem>>, vector<8x128xf32>,
    return
  }
  func.func @transform_0(%arg0: i32) -> (i32, i32) {
    %c0_i32 = arith.constant 0 : i32
    %c0_i32_0 = arith.constant 0 : i32
    return %arg0, %c0_i32 : i32, i32
  }
  func.func @transform_1(%arg0: i32) -> (i32, i32) {
    %c0_i32 = arith.constant 0 : i32
    %c0_i32_0 = arith.constant 0 : i32
    %c0_i32_1 = arith.constant 0 : i32
    return %c0_i32, %c0_i32_0 : i32, i32
  }
  func.func @transform_2(%arg0: i32) -> (i32, i32) {
    %c0_i32 = arith.constant 0 : i32
    %c0_i32_0 = arith.constant 0 : i32
    %c0_i32_1 = arith.constant 0 : i32
    return %c0_i32, %c0_i32_0 : i32, i32
  }
  func.func @transform_3(%arg0: i32) -> (i32, i32) {
    %c0_i32 = arith.constant 0 : i32
    %c0_i32_0 = arith.constant 0 : i32
    return %arg0, %c0_i32 : i32, i32
  }
}

</mosaic_0001>

<bundles_post_ra>
// kernel: tpu_custom_call.1
= control target key start
LH: loop header
LB: loop body
LE: loop exit
PB: predicated region body
PF: predicated region fallthrough
CT: control target
= control target key end

     0   :  { %8 = vsyncpa [#allocation3], 0  ;;  %s383_s0 = inlined_call_operand.hbm [shape: f32[8,128], index: 0, kind: input, shape index: {}]   ;;  %s384_s1 = inlined_call_operand.hbm [shape: f32[128,128], index: 1, kind: input, shape index: {}]   ;;  %s385_s2 = inlined_call_operand.vmem [shape: f32[1,128], index: 2, kind: input, shape index: {}]   ;;  %s386_s3 = inlined_call_operand.hbm [shape: f32[8,128], index: 3, kind: output, shape index: {}]  }
   0x1   :  { %9 = vsyncpa [#allocation6], 0 }
   0x2   :  { %10 = vsyncpa [#allocation4], 0  ;;  %s309_s12 = smov [#allocation2]   ;;  %s310_s14 = smov [#allocation5]  }
   0x3   :  { %s17_s13 = sshll.u32 %s309_s12, 4  ;;  %s26_s15 = sshll.u32 %s310_s14, 4  ;;  %s18_s13 = int_to_ptr.vmem [resolvable:$true] %s17_s13  ;;  %s337_s15 = int_to_ptr.vmem [resolvable:$true] %s26_s15 }
   0x4   :  { %s237_s18 = scalar_lea.hbm %s383_s0, 128 }
   0x5   :  { %p238_p0 = scmp.ne.s32.totalorder %s383_s0, %s237_s18  ;;  %p241_p1 = scmp.lt.u32.totalorder %s237_s18, %s383_s0 }
   0x7   :  { %p243_p2 = pnand %p241_p1, %p238_p0 }
   0x9   :  { %246 = shalt.err (!%p243_p2)
}
   0xa   :  { %s247_s23 = scalar_lea.vmem %s18_s13, 128  ;;  %p252_p4 = scmp.lt.s32.totalorder %s18_s13, %s18_s13 }
   0xb   :  { %p248_p3 = scmp.ne.s32.totalorder %s18_s13, %s247_s23  ;;  %p253_p5 = scmp.lt.s32.totalorder %s247_s23, %s247_s23 }
   0xd   :  { %p254_p6 = por %p253_p5, %p252_p4 }
   0xf   :  { %p255_p7 = pnand %p254_p6, %p248_p3 }
  0x11   :  { %258 = shalt.err (!%p255_p7)
}
  0x12   :  { %20 = dma.hbm_to_vmem [thread:$0]  %s383_s0, 128, %s18_s13, [#allocation3]  }
  0x13   :  { %s259_s28 = scalar_lea.hbm %s384_s1, 2048 }
  0x14   :  { %p260_p8 = scmp.ne.s32.totalorder %s384_s1, %s259_s28  ;;  %p263_p9 = scmp.lt.u32.totalorder %s259_s28, %s384_s1 }
  0x16   :  { %p265_p10 = pnand %p263_p9, %p260_p8 }
  0x18   :  { %268 = shalt.err (!%p265_p10)
}
  0x19   :  { %s269_s6 = scalar_lea.vmem %s337_s15, 2048  ;;  %p274_p12 = scmp.lt.s32.totalorder %s337_s15, %s337_s15 }
  0x1a   :  { %p270_p11 = scmp.ne.s32.totalorder %s337_s15, %s269_s6  ;;  %p275_p13 = scmp.lt.s32.totalorder %s269_s6, %s269_s6 }
  0x1c   :  { %p276_p0 = por %p275_p13, %p274_p12 }
  0x1e   :  { %p277_p1 = pnand %p276_p0, %p270_p11 }
  0x20   :  { %280 = shalt.err (!%p277_p1)
}
  0x21   :  { %s311_s0 = smov 128   ;;  %s312_s7 = smov 8  }
  0x22   :  { %32 = dma.hbm_to_vmem [thread:$0]  %s384_s1, 2048, %s337_s15, [#allocation6], %s311_s0, %s311_s0, %s312_s7  }
  0x23   :  { %303 = dma.done.wait [#allocation3], 128  }
  0x24   :  { %304 = vsyncadd [#allocation3], 4294967168 }
  0x25   :  { %305 = dma.done.wait [#allocation6], 2048  }
  0x26   :  { %306 = vsyncadd [#allocation6], 4294965248  ;;  %v313_v0 = vmov 0.0|0.0   ;;  %vm314_vm0 = vmmov 0   ;;  %v315_v1 = vmov 0.0   ;;  %v42_v2 = vld [vmem:[#allocation5] sm:$0xff] }
  0x27   :  { %205 = vmatprep.subr.bf16.mxu0 %v313_v0  ;;  %202 = vmatprep.mubr.msk.f32.mxu0 %vm314_vm0, %v315_v1  ;;  %v43_v3 = vld [vmem:[#allocation5 + $0x8] sm:$0xff]  ;;  %v44_v4 = vld [vmem:[#allocation5 + $0x10] sm:$0xff]  ;;  %v45_v6 = vld [vmem:[#allocation5 + $0x18] sm:$0xff]  ;;  %s316_s11 = smov [#allocation7]  }
  0x28   :  { %v206_v5 = vpack.c.bf16 %v43_v3, %v42_v2  ;;  %v209_v7 = vpack.c.bf16 %v45_v6, %v44_v4  ;;  %v46_v8 = vld [vmem:[#allocation5 + $0x20] sm:$0xff]  ;;  %v47_v9 = vld [vmem:[#allocation5 + $0x28] sm:$0xff]  ;;  %v48_v11 = vld [vmem:[#allocation5 + $0x30] sm:$0xff]  ;;  %s142_s12 = sshll.u32 %s316_s11, 4  ;;  %s143_s12 = int_to_ptr.vmem [resolvable:$true] %s142_s12 }
  0x29   :  { %v212_v10 = vpack.c.bf16 %v47_v9, %v46_v8  ;;  %v49_v12 = vld [vmem:[#allocation5 + $0x38] sm:$0xff]  ;;  %v50_v14 = vld [vmem:[#allocation5 + $0x40] sm:$0xff]  ;;  %v51_v15 = vld [vmem:[#allocation5 + $0x48] sm:$0xff]  ;;  %s281_s13 = scalar_lea.vmem %s143_s12, 128  ;;  %p286_p3 = scmp.lt.s32.totalorder %s143_s12, %s143_s12 }
  0x2a   :  { %207 = vmatpush3.bf16.msra.mxu0 %v206_v5  ;;  %v215_v13 = vpack.c.bf16 %v49_v12, %v48_v11  ;;  %v218_v16 = vpack.c.bf16 %v51_v15, %v50_v14  ;;  %v52_v17 = vld [vmem:[#allocation5 + $0x50] sm:$0xff]  ;;  %v53_v18 = vld [vmem:[#allocation5 + $0x58] sm:$0xff]  ;;  %v54_v20 = vld [vmem:[#allocation5 + $0x60] sm:$0xff]  ;;  %p282_p2 = scmp.ne.s32.totalorder %s143_s12, %s281_s13  ;;  %p287_p4 = scmp.lt.s32.totalorder %s281_s13, %s281_s13 }
  0x2b   :  { %208 = vmatprep.subr.bf16.mxu0 %v313_v0  ;;  %v221_v19 = vpack.c.bf16 %v53_v18, %v52_v17  ;;  %v55_v21 = vld [vmem:[#allocation5 + $0x68] sm:$0xff]  ;;  %v56_v23 = vld [vmem:[#allocation5 + $0x70] sm:$0xff]  ;;  %v57_v24 = vld [vmem:[#allocation5 + $0x78] sm:$0xff] }
  0x2c   :  { %v224_v22 = vpack.c.bf16 %v55_v21, %v54_v20  ;;  %v227_v25 = vpack.c.bf16 %v57_v24, %v56_v23  ;;  %v41_v26 = vld [vmem:[#allocation2] sm:$0xff]  ;;  %p288_p5 = por %p287_p4, %p286_p3 }
  0x2d   :  { %v152_v27 = vld [vmem:[%s385_s2] ss:$0 sm:$0xff] }
  0x2e   :  { %210 = vmatpush3.bf16.msra.mxu0 %v209_v7  ;;  %p289_p6 = pnand %p288_p5, %p282_p2 }
  0x2f   :  { %211 = vmatprep.subr.bf16.mxu0 %v313_v0 }
  0x32   :  { %213 = vmatpush3.bf16.msra.mxu0 %v212_v10 }
  0x33   :  { %214 = vmatprep.subr.bf16.mxu0 %v313_v0 }
  0x36   :  { %216 = vmatpush3.bf16.msra.mxu0 %v215_v13 }
  0x37   :  { %217 = vmatprep.subr.bf16.mxu0 %v313_v0 }
  0x3a   :  { %219 = vmatpush3.bf16.msra.mxu0 %v218_v16 }
  0x3b   :  { %220 = vmatprep.subr.bf16.mxu0 %v313_v0 }
  0x3e   :  { %222 = vmatpush3.bf16.msra.mxu0 %v221_v19 }
  0x3f   :  { %223 = vmatprep.subr.bf16.mxu0 %v313_v0 }
  0x42   :  { %225 = vmatpush3.bf16.msra.mxu0 %v224_v22 }
  0x43   :  { %226 = vmatprep.subr.bf16.mxu0 %v313_v0 }
  0x46   :  { %228 = vmatpush3.bf16.msra.mxu0 %v227_v25 }
  0x49   :  { %203 = vmatmul.mubr.f32.vlgmr.msra.gmra.mrb[0].mxu0 %v41_v26 }
 0x11c   :  { %v131_v28 = vpop.f32.mrb[0].mxu0 }
 0x11d   :  { %v132_v29 = vadd.f32 %v152_v27, %v131_v28  ;;  %v204_v30 = vpop.f32.mrb[1].mxu0 }
 0x11f   :  { %135 = vst [vmem:[#allocation7] sm:$0xff] %v132_v29 }
 0x120   :  { %292 = shalt.err (!%p289_p6)
}
 0x121   :  { %s293_s16 = scalar_lea.hbm %s386_s3, 128 }
 0x122   :  { %p294_p7 = scmp.ne.s32.totalorder %s386_s3, %s293_s16  ;;  %p297_p8 = scmp.lt.u32.totalorder %s293_s16, %s386_s3 }
 0x124   :  { %p299_p9 = pnand %p297_p8, %p294_p7 }
 0x126   :  { %302 = shalt.err (!%p299_p9)
}
 0x127   :  { %145 = dma.vmem_to_hbm [thread:$0]  %s143_s12, 128, %s386_s3, [#allocation4]  }
 0x128   :  { %307 = dma.done.wait [#allocation4], 128  }
 0x129   :  { %308 = vsyncadd [#allocation4], 4294967168 }
 0x12a   :  { %149 = vsyncpa [#allocation3], 1 }
 0x12b   :  { %150 = vsyncpa [#allocation6], 1 }
 0x12c   :  { %151 = vsyncpa [#allocation4], 1 }

</bundles_post_ra>
